<compile_context>
chip_gen: v7x
topology: tpu7x:2x2x1
jax: 0.10.0
libtpu: 0.0.40
codegen_flags: <defaults>
</compile_context>

<pallas_src>
import numpy as np
import jax
import jax.numpy as jnp
from jax.experimental import pallas as pl
from jax.experimental.pallas import tpu as pltpu

# ---- model hyper-parameters (synthetic, matching CNN_Text __init__ shapes) ----
V = 100          # embed_num  (vocab size)
D = 32           # embed_dim
C = 4            # class_num
CO = 8           # kernel_num (Co)
KS = (3, 4, 5)   # kernel_sizes
N = 2            # batch
L = 16           # sequence length

LANE = 128                     # lane-dense padding target
MXU_DTYPE = jnp.bfloat16       # MXU operand dtype (accumulation stays f32)


def cnn_text_forward(tokens, params, ks=KS):
    """tokens: (N, L) int32 token ids. Returns (N, C) logits."""
    n_batch, seq_len = tokens.shape
    vocab, d = params["embed"].shape
    co = params["b3"].shape[1]
    n_classes = params["wfc"].shape[1]
    kmax = max(ks)
    c_pack = len(ks) * co                               # packed conv channels (24)
    c_pad = pl.cdiv(c_pack, LANE) * LANE                # lane-dense channels (128)
    out_pad = pl.cdiv(n_classes, LANE) * LANE           # lane-dense logits  (128)
    nl = n_batch * seq_len
    nl_pad = nl + 8                                     # zeroed tail so k-shifted slices stay in-bounds

    # ---- host-side glue (layout plumbing only): pack/pad weights, build mask ----
    w_pack = jnp.concatenate(
        [jnp.pad(params[f"w{K}"], ((0, kmax - K), (0, 0), (0, 0))) for K in ks],
        axis=2).reshape(kmax * d, c_pack)                               # (Kmax*D, 24)
    w_pack = jnp.pad(w_pack, ((0, 0), (0, c_pad - c_pack))).astype(MXU_DTYPE)   # (Kmax*D, 128)
    b_pack = jnp.pad(jnp.concatenate([params[f"b{K}"] for K in ks], axis=1),
                     ((0, 0), (0, c_pad - c_pack)))                     # (1, 128) f32
    wfc = jnp.pad(params["wfc"], ((0, c_pad - c_pack),
                                  (0, out_pad - n_classes))).astype(MXU_DTYPE)  # (128, 128)
    bfc = jnp.pad(params["bfc"], ((0, 0), (0, out_pad - n_classes)))    # (1, 128) f32

    # 0/1 time-validity mask per packed channel (0 is neutral post-ReLU, pre-max).
    mask_np = np.zeros((seq_len, c_pad), np.float32)
    for i, K in enumerate(ks):
        mask_np[: seq_len - K + 1, i * co:(i + 1) * co] = 1.0
    mask = jnp.asarray(np.tile(mask_np, (n_batch, 1)))                  # (nl, 128)

    tok_flat = tokens.reshape(nl).astype(jnp.int32)                     # (nl,) -> SMEM
    embed = params["embed"].astype(jnp.float32)                         # stays in HBM

    def kernel(tok_ref, emb_hbm, wp_ref, bp_ref, mask_ref, wfc_ref, bfc_ref,
               out_ref, x_buf, gsem):
        # ---- DMA row gather: x_buf[i, :] = embed[tokens[i], :] (overlapped) ----
        @pl.loop(0, nl)
        def _start(i):
            pltpu.make_async_copy(emb_hbm.at[tok_ref[i]], x_buf.at[i], gsem).start()

        @pl.loop(0, nl)
        def _drain(i):
            # Wait descriptor only needs a matching copy size.
            pltpu.make_async_copy(emb_hbm.at[0], x_buf.at[0], gsem).wait()

        # Zero the tail rows read by the k>0 shifted slices: keeps the (masked)
        # invalid conv rows finite so `* mask` is exact.
        x_buf[nl:nl_pad, :] = jnp.zeros((nl_pad - nl, d), jnp.float32)

        # ---- conv as kmax per-tap matmuls: acc[t] += x[t+k] @ W[k] ----
        acc = jnp.zeros((nl, c_pad), jnp.float32)
        for k in range(kmax):                                   # static, kmax == 5
            xk = x_buf[k:k + nl, :].astype(MXU_DTYPE)           # (nl, d) bf16
            acc = acc + jnp.dot(xk, wp_ref[k * d:(k + 1) * d, :],
                                preferred_element_type=jnp.float32)

        # bias + ReLU, then zero invalid time steps / pad channels.
        conv = jnp.maximum(acc + bp_ref[...], 0.0) * mask_ref[...]     # (nl, 128)

        # max-pool over time, then fc (dropout = identity at inference).
        feat = jnp.max(conv.reshape(n_batch, seq_len, c_pad), axis=1)  # (N, 128)
        out_ref[...] = jnp.dot(feat.astype(MXU_DTYPE), wfc_ref[...],
                               preferred_element_type=jnp.float32) + bfc_ref[...]

    vmem = pl.BlockSpec(memory_space=pltpu.MemorySpace.VMEM)
    smem = pl.BlockSpec(memory_space=pltpu.MemorySpace.SMEM)
    hbm = pl.BlockSpec(memory_space=pl.ANY)

    logits_pad = pl.pallas_call(
        kernel,
        out_shape=jax.ShapeDtypeStruct((n_batch, out_pad), jnp.float32),
        in_specs=[smem, hbm, vmem, vmem, vmem, vmem, vmem],
        out_specs=vmem,
        scratch_shapes=[pltpu.VMEM((nl_pad, d), jnp.float32),
                        pltpu.SemaphoreType.DMA(())],
    )(tok_flat, embed, w_pack, b_pack, mask, wfc, bfc)

    return logits_pad[:, :n_classes]                                   # (N, C)


def ref_forward(tokens, params):
    """Pure-JAX f32 reference (embedding gather + per-branch conv)."""
    x_emb = jnp.take(params["embed"], tokens, axis=0)                   # (N, L, D)
    feats = []
    for K, wk, bk in ((3, params["w3"], params["b3"]),
                      (4, params["w4"], params["b4"]),
                      (5, params["w5"], params["b5"])):
        T = x_emb.shape[1] - K + 1
        windows = jnp.stack([x_emb[:, k:k + T, :] for k in range(K)], axis=2)  # (N,T,K,D)
        conv = jnp.einsum("ntkd,kdc->ntc", windows, wk) + bk                   # (N,T,Co)
        conv = jnp.maximum(conv, 0.0)
        feats.append(jnp.max(conv, axis=1))                                    # (N,Co)
    feat = jnp.concatenate(feats, axis=1)
    return feat @ params["wfc"] + params["bfc"]


def init_params(key):
    keys = jax.random.split(key, 10)
    params = {
        "embed": jax.random.normal(keys[0], (V, D), jnp.float32) * 0.1,
        "w3": jax.random.normal(keys[1], (3, D, CO), jnp.float32) * 0.1,
        "b3": jax.random.normal(keys[2], (1, CO), jnp.float32) * 0.1,
        "w4": jax.random.normal(keys[3], (4, D, CO), jnp.float32) * 0.1,
        "b4": jax.random.normal(keys[4], (1, CO), jnp.float32) * 0.1,
        "w5": jax.random.normal(keys[5], (5, D, CO), jnp.float32) * 0.1,
        "b5": jax.random.normal(keys[6], (1, CO), jnp.float32) * 0.1,
        "wfc": jax.random.normal(keys[7], (len(KS) * CO, C), jnp.float32) * 0.1,
        "bfc": jax.random.normal(keys[8], (1, C), jnp.float32) * 0.1,
    }
    return params, keys[9]


if __name__ == "__main__":
    key = jax.random.PRNGKey(0)
    params, key = init_params(key)

    tokens = jax.random.randint(key, (N, L), 0, V)                 # (N, L) int32

    logits = cnn_text_forward(tokens, params)
    jax.block_until_ready(logits)

    ref = ref_forward(tokens, params)
    assert logits.shape == (N, C)
    # bf16 MXU operands with f32 accumulation -> relaxed comparison tolerance.
    assert jnp.allclose(logits, ref, atol=2e-2, rtol=2e-2), "mismatch vs JAX reference"

    print("KERNEL_OK")
</pallas_src>

<mosaic_0001>
module attributes {stable_mosaic.version = 11 : i64} {
  func.func @kernel(%arg0: memref<32xi32, #tpu.memory_space<smem>>, %arg1: memref<100x32xf32, #tpu.memory_space<any>>, %arg2: memref<160x128xbf16, #tpu.memory_space<vmem>>, %arg3: memref<1x128xf32, #tpu.memory_space<vmem>>, %arg4: memref<32x128xf32, #tpu.memory_space<vmem>>, %arg5: memref<128x128xbf16, #tpu.memory_space<vmem>>, %arg6: memref<1x128xf32, #tpu.memory_space<vmem>>, %arg7: memref<2x128xf32, #tpu.memory_space<vmem>>, %arg8: memref<40x32xf32, #tpu.memory_space<vmem>>, %arg9: memref<!tpu.dma_semaphore, #tpu.memory_space<semaphore_mem>>) attributes {dimension_semantics = [], scalar_prefetch = 0 : i64, scratch_operands = 2 : i64, tpu.core_type = #tpu.core_type<tc>} {
    %c0_i32 = arith.constant 0 : i32
    %c32_i32 = arith.constant 32 : i32
    %0 = arith.addi %c0_i32, %c32_i32 : i32
    %c1_i32 = arith.constant 1 : i32
    scf.for %arg10 = %c0_i32 to %0 step %c1_i32  : i32 {
      %c1_i32_36 = arith.constant 1 : i32
      %46 = arith.muli %arg10, %c1_i32_36 : i32
      %c0_i32_37 = arith.constant 0 : i32
      %47 = arith.addi %c0_i32_37, %46 : i32
      %48 = arith.index_cast %47 : i32 to index
      %49 = memref.load %arg0[%48] : memref<32xi32, #tpu.memory_space<smem>>
      %c0_i32_38 = arith.constant 0 : i32
      %50 = tpu.memref_slice %arg1[%49, %c0_i32_38] : memref<100x32xf32, #tpu.memory_space<any>> -> memref<1x32xf32, #tpu.memory_space<any>>
      %51 = tpu.memref_squeeze %50 : memref<1x32xf32, #tpu.memory_space<any>> -> memref<32xf32, #tpu.memory_space<any>>
      %c0_i32_39 = arith.constant 0 : i32
      %52 = tpu.memref_slice %arg8[%47, %c0_i32_39] : memref<40x32xf32, #tpu.memory_space<vmem>> -> memref<1x32xf32, #tpu.memory_space<vmem>>
      %53 = tpu.memref_squeeze %52 : memref<1x32xf32, #tpu.memory_space<vmem>> -> memref<32xf32, #tpu.memory_space<vmem>>
      tpu.enqueue_dma source(%51 : memref<32xf32, #tpu.memory_space<any>>) target(%53 : memref<32xf32, #tpu.memory_space<vmem>>) target_semaphore(%arg9 : memref<!tpu.dma_semaphore, #tpu.memory_space<semaphore_mem>>)
    }
    %c32_i32_0 = arith.constant 32 : i32
    %c0_i32_1 = arith.constant 0 : i32
    %c32_i32_2 = arith.constant 32 : i32
    %1 = arith.addi %c0_i32_1, %c32_i32_2 : i32
    %c1_i32_3 = arith.constant 1 : i32
    scf.for %arg10 = %c0_i32_1 to %1 step %c1_i32_3  : i32 {
      %c0_i32_36 = arith.constant 0 : i32
      %c0_i32_37 = arith.constant 0 : i32
      %c0_i32_38 = arith.constant 0 : i32
      %46 = tpu.memref_slice %arg1[%c0_i32_36, %c0_i32_38] : memref<100x32xf32, #tpu.memory_space<any>> -> memref<1x32xf32, #tpu.memory_space<any>>
      %47 = tpu.memref_squeeze %46 : memref<1x32xf32, #tpu.memory_space<any>> -> memref<32xf32, #tpu.memory_space<any>>
      %c0_i32_39 = arith.constant 0 : i32
      %48 = tpu.memref_slice %arg8[%c0_i32_37, %c0_i32_39] : memref<40x32xf32, #tpu.memory_space<vmem>> -> memref<1x32xf32, #tpu.memory_space<vmem>>
      %49 = tpu.memref_squeeze %48 : memref<1x32xf32, #tpu.memory_space<vmem>> -> memref<32xf32, #tpu.memory_space<vmem>>
      tpu.wait_dma2 semaphore(%arg9 : memref<!tpu.dma_semaphore, #tpu.memory_space<semaphore_mem>>) src(%47 : memref<32xf32, #tpu.memory_space<any>>) dst(%49 : memref<32xf32, #tpu.memory_space<vmem>>)
    }
    %cst = arith.constant 0.000000e+00 : f32
    %2 = vector.broadcast %cst : f32 to vector<8x32xf32>
    %c32 = arith.constant 32 : index
    %c0 = arith.constant 0 : index
    %3 = vector.load %arg8[%c32, %c0] : memref<40x32xf32, #tpu.memory_space<vmem>>, vector<8x32xf32>
    tpu.vector_store %arg8[%c32, %c0], %2 {strides = array<i32>} : memref<40x32xf32, #tpu.memory_space<vmem>>, vector<8x32xf32>,
    %cst_4 = arith.constant 0.000000e+00 : f32
    %4 = vector.broadcast %cst_4 : f32 to vector<32x128xf32>
    %c0_5 = arith.constant 0 : index
    %c0_6 = arith.constant 0 : index
    %5 = vector.load %arg8[%c0_5, %c0_6] : memref<40x32xf32, #tpu.memory_space<vmem>>, vector<32x32xf32>
    %6 = arith.truncf %5 : vector<32x32xf32> to vector<32x32xbf16>
    %c0_7 = arith.constant 0 : index
    %c0_8 = arith.constant 0 : index
    %7 = vector.load %arg2[%c0_7, %c0_8] : memref<160x128xbf16, #tpu.memory_space<vmem>>, vector<32x128xbf16>
    %cst_9 = arith.constant dense<0.000000e+00> : vector<32x128xf32>
    %8 = tpu.matmul %6, %7, %cst_9 {dimension_numbers = #tpu.dot_dimension_numbers<[1], [0], [0], [1], [0, 0, 1, 1], [], []>} : vector<32x32xbf16>, vector<32x128xbf16>, vector<32x128xf32> -> vector<32x128xf32>
    %9 = arith.addf %4, %8 : vector<32x128xf32>
    %c1 = arith.constant 1 : index
    %c0_10 = arith.constant 0 : index
    %10 = vector.load %arg8[%c1, %c0_10] : memref<40x32xf32, #tpu.memory_space<vmem>>, vector<32x32xf32>
    %11 = arith.truncf %10 : vector<32x32xf32> to vector<32x32xbf16>
    %c32_11 = arith.constant 32 : index
    %c0_12 = arith.constant 0 : index
    %12 = vector.load %arg2[%c32_11, %c0_12] : memref<160x128xbf16, #tpu.memory_space<vmem>>, vector<32x128xbf16>
    %cst_13 = arith.constant dense<0.000000e+00> : vector<32x128xf32>
    %13 = tpu.matmul %11, %12, %cst_13 {dimension_numbers = #tpu.dot_dimension_numbers<[1], [0], [0], [1], [0, 0, 1, 1], [], []>} : vector<32x32xbf16>, vector<32x128xbf16>, vector<32x128xf32> -> vector<32x128xf32>
    %14 = arith.addf %9, %13 : vector<32x128xf32>
    %c2 = arith.constant 2 : index
    %c0_14 = arith.constant 0 : index
    %15 = vector.load %arg8[%c2, %c0_14] : memref<40x32xf32, #tpu.memory_space<vmem>>, vector<32x32xf32>
    %16 = arith.truncf %15 : vector<32x32xf32> to vector<32x32xbf16>
    %c64 = arith.constant 64 : index
    %c0_15 = arith.constant 0 : index
    %17 = vector.load %arg2[%c64, %c0_15] : memref<160x128xbf16, #tpu.memory_space<vmem>>, vector<32x128xbf16>
    %cst_16 = arith.constant dense<0.000000e+00> : vector<32x128xf32>
    %18 = tpu.matmul %16, %17, %cst_16 {dimension_numbers = #tpu.dot_dimension_numbers<[1], [0], [0], [1], [0, 0, 1, 1], [], []>} : vector<32x32xbf16>, vector<32x128xbf16>, vector<32x128xf32> -> vector<32x128xf32>
    %19 = arith.addf %14, %18 : vector<32x128xf32>
    %c3 = arith.constant 3 : index
    %c0_17 = arith.constant 0 : index
    %20 = vector.load %arg8[%c3, %c0_17] : memref<40x32xf32, #tpu.memory_space<vmem>>, vector<32x32xf32>
    %21 = arith.truncf %20 : vector<32x32xf32> to vector<32x32xbf16>
    %c96 = arith.constant 96 : index
    %c0_18 = arith.constant 0 : index
    %22 = vector.load %arg2[%c96, %c0_18] : memref<160x128xbf16, #tpu.memory_space<vmem>>, vector<32x128xbf16>
    %cst_19 = arith.constant dense<0.000000e+00> : vector<32x128xf32>
    %23 = tpu.matmul %21, %22, %cst_19 {dimension_numbers = #tpu.dot_dimension_numbers<[1], [0], [0], [1], [0, 0, 1, 1], [], []>} : vector<32x32xbf16>, vector<32x128xbf16>, vector<32x128xf32> -> vector<32x128xf32>
    %24 = arith.addf %19, %23 : vector<32x128xf32>
    %c4 = arith.constant 4 : index
    %c0_20 = arith.constant 0 : index
    %25 = vector.load %arg8[%c4, %c0_20] : memref<40x32xf32, #tpu.memory_space<vmem>>, vector<32x32xf32>
    %26 = arith.truncf %25 : vector<32x32xf32> to vector<32x32xbf16>
    %c128 = arith.constant 128 : index
    %c0_21 = arith.constant 0 : index
    %27 = vector.load %arg2[%c128, %c0_21] : memref<160x128xbf16, #tpu.memory_space<vmem>>, vector<32x128xbf16>
    %cst_22 = arith.constant dense<0.000000e+00> : vector<32x128xf32>
    %28 = tpu.matmul %26, %27, %cst_22 {dimension_numbers = #tpu.dot_dimension_numbers<[1], [0], [0], [1], [0, 0, 1, 1], [], []>} : vector<32x32xbf16>, vector<32x128xbf16>, vector<32x128xf32> -> vector<32x128xf32>
    %29 = arith.addf %24, %28 : vector<32x128xf32>
    %c0_23 = arith.constant 0 : index
    %c0_24 = arith.constant 0 : index
    %30 = vector.load %arg3[%c0_23, %c0_24] : memref<1x128xf32, #tpu.memory_space<vmem>>, vector<1x128xf32>
    %31 = vector.broadcast %30 : vector<1x128xf32> to vector<32x128xf32>
    %32 = arith.addf %29, %31 : vector<32x128xf32>
    %cst_25 = arith.constant 0.000000e+00 : f32
    %33 = vector.broadcast %cst_25 : f32 to vector<32x128xf32>
    %34 = arith.maximumf %32, %33 : vector<32x128xf32>
    %c0_26 = arith.constant 0 : index
    %c0_27 = arith.constant 0 : index
    %35 = vector.load %arg4[%c0_26, %c0_27] : memref<32x128xf32, #tpu.memory_space<vmem>>, vector<32x128xf32>
    %36 = arith.mulf %34, %35 : vector<32x128xf32>
    %37 = vector.shape_cast %36 : vector<32x128xf32> to vector<2x16x128xf32>
    %cst_28 = arith.constant dense<0xFF800000> : vector<2x128xf32>
    %38 = vector.multi_reduction <maximumf>, %37, %cst_28 [1] : vector<2x16x128xf32> to vector<2x128xf32>
    %39 = arith.truncf %38 : vector<2x128xf32> to vector<2x128xbf16>
    %c0_29 = arith.constant 0 : index
    %c0_30 = arith.constant 0 : index
    %40 = vector.load %arg5[%c0_29, %c0_30] : memref<128x128xbf16, #tpu.memory_space<vmem>>, vector<128x128xbf16>
    %cst_31 = arith.constant dense<0.000000e+00> : vector<2x128xf32>
    %41 = tpu.matmul %39, %40, %cst_31 {dimension_numbers = #tpu.dot_dimension_numbers<[1], [0], [0], [1], [0, 0, 1, 1], [], []>} : vector<2x128xbf16>, vector<128x128xbf16>, vector<2x128xf32> -> vector<2x128xf32>
    %c0_32 = arith.constant 0 : index
    %c0_33 = arith.constant 0 : index
    %42 = vector.load %arg6[%c0_32, %c0_33] : memref<1x128xf32, #tpu.memory_space<vmem>>, vector<1x128xf32>
    %43 = vector.broadcast %42 : vector<1x128xf32> to vector<2x128xf32>
    %44 = arith.addf %41, %43 : vector<2x128xf32>
    %c0_34 = arith.constant 0 : index
    %c0_35 = arith.constant 0 : index
    %45 = vector.load %arg7[%c0_34, %c0_35] : memref<2x128xf32, #tpu.memory_space<vmem>>, vector<2x128xf32>
    tpu.vector_store %arg7[%c0_34, %c0_35], %44 {strides = array<i32>} : memref<2x128xf32, #tpu.memory_space<vmem>>, vector<2x128xf32>,
    return
  }
}

</mosaic_0001>

<bundles_post_ra>
// kernel: tpu_custom_call.1
= control target key start
LH: loop header
LB: loop body
LE: loop exit
PB: predicated region body
PF: predicated region fallthrough
CT: control target
= control target key end

     0   :  { %12 = vsyncpa [#allocation7], 0  ;;  %s1131_s0 = inlined_call_operand.vmem [shape: s32[32], index: 0, kind: input, shape index: {}]   ;;  %s1132_s1 = inlined_call_operand.vmem [shape: f32[100,32], index: 1, kind: input, shape index: {}]   ;;  %s1133_s2 = inlined_call_operand.vmem [shape: bf16[160,128], index: 2, kind: input, shape index: {}]   ;;  %s1134_s3 = inlined_call_operand.vmem [shape: f32[1,128], index: 3, kind: input, shape index: {}]   ;;  %s1135_s4 = inlined_call_operand.hbm [shape: f32[32,128], index: 4, kind: input, shape index: {}]   ;;  %s1136_s5 = inlined_call_operand.vmem [shape: bf16[128,128], index: 5, kind: input, shape index: {}]   ;;  %s1137_s6 = inlined_call_operand.vmem [shape: f32[1,128], index: 6, kind: input, shape index: {}]   ;;  %s1138_s7 = inlined_call_operand.hbm [shape: f32[2,128], index: 7, kind: output, shape index: {}]  }
   0x1   :  { %13 = vsyncpa [#allocation5], 0 }
   0x2   :  { %14 = vsyncpa [#allocation6], 0  ;;  %s21_s26 = sshll.u32 %s1131_s0, 4  ;;  %s22_s26 = int_to_ptr.vmem [resolvable:$true] %s21_s26 }
   0x3   :  { %s893_s27 = scalar_lea.vmem %s22_s26, 16  ;;  %p898_p1 = scmp.lt.s32.totalorder %s22_s26, %s22_s26 }
   0x4   :  { %p894_p0 = scmp.ne.s32.totalorder %s22_s26, %s893_s27  ;;  %p899_p2 = scmp.lt.s32.totalorder %s893_s27, %s893_s27 }
   0x6   :  { %p900_p3 = por %p899_p2, %p898_p1 }
   0x8   :  { %p901_p4 = pnand %p900_p3, %p894_p0 }
   0xa   :  { %904 = shalt.err (!%p901_p4)
}
   0xb   :  { %s973_s28 = smov [#allocation4]   ;;  %s974_s29 = smov [#allocation8]  }
   0xc   :  { %24 = dma.vmem_to_smem %s22_s26, 16, %s973_s28, [#allocation7]  }
   0xd   :  { %s34_s30 = sshll.u32 %s974_s29, 4  ;;  %s905_s10 = scalar_lea.hbm %s1135_s4, 512  ;;  %s35_s30 = int_to_ptr.vmem [resolvable:$true] %s34_s30 }
   0xe   :  { %p906_p5 = scmp.ne.s32.totalorder %s1135_s4, %s905_s10  ;;  %p909_p6 = scmp.lt.u32.totalorder %s905_s10, %s1135_s4 }
  0x10   :  { %p911_p7 = pnand %p909_p6, %p906_p5 }
  0x12   :  { %914 = shalt.err (!%p911_p7)
}
  0x13   :  { %s915_s14 = scalar_lea.vmem %s35_s30, 512  ;;  %p920_p9 = scmp.lt.s32.totalorder %s35_s30, %s35_s30 }
  0x14   :  { %p916_p8 = scmp.ne.s32.totalorder %s35_s30, %s915_s14  ;;  %p921_p10 = scmp.lt.s32.totalorder %s915_s14, %s915_s14 }
  0x16   :  { %p922_p11 = por %p921_p10, %p920_p9 }
  0x18   :  { %p923_p12 = pnand %p922_p11, %p916_p8 }
  0x1a   :  { %926 = shalt.err (!%p923_p12)
}
  0x1b   :  { %s975_s15 = smov 128   ;;  %s976_s16 = smov 8  }
  0x1c   :  { %40 = dma.hbm_to_vmem [thread:$0]  %s1135_s4, 512, %s35_s30, [#allocation5], %s975_s15, %s975_s15, %s976_s16  }
  0x1d   :  { %957 = dma.done.wait [#allocation7], 16  }
  0x1e   :  { %958 = vsyncadd [#allocation7], 4294967280 }
  0x1f   :  { %959 = dma.done.wait [#allocation5], 512  }
  0x20   :  { %960 = vsyncadd [#allocation5], 4294966784 }
  0x21   :  { %51 = sfence }
  0x22   :  { %s965_s19 = smov 0  }
  0x23 LB: > { %s59_s20 = sld [smem:[#allocation4 + %s967_s19]]  ;;  %s61_s24 = scalar_lea.vmem [#allocation2], %s967_s19  ;;  %s967_s19 = sphi %s965_s19, %s58_s19  }
  0x29   : > { %s60_s23 = scalar_lea.vmem %s1132_s1, %s59_s20 }
  0x2a   : > { %v79_v0 = vld [vmem:[%s60_s23] sm:$0x1] }
  0x2b   : > { %80 = vst [vmem:[%s61_s24] sm:$0x1] %v79_v0 }
  0x2c   : > { %105 = vsyncadd [#allocation3], 16  ;;  %s58_s19 = sadd.s32 1, %s967_s19  }
  0x2d   : > { %p55_p13 = scmp.ge.s32.totalorder %s58_s19, 32  }
  0x2e   :  { %s969_s4 = smov (%p55_p13), 0  }
  0x2f   :  { %57 = sbr.rel (!%p55_p13) target bundleno = 35 (0x23), region = 108 }
  0x36 LB: > { %961 = dma.done.wait [#allocation3], 16  ;;  %s971_s4 = sphi %s969_s4, %s111_s4  }
  0x37   : > { %962 = vsyncadd [#allocation3], 4294967280  ;;  %s111_s4 = sadd.s32 1, %s971_s4  }
  0x38   : > { %p108_p0 = scmp.ge.s32.totalorder %s111_s4, 32  }
  0x39   :  { %v875_v1 = vld [vmem:[%s1133_s2 + $0x10] sm:$0xff] (%p108_p0)   ;;  %vm114_vm0 = vcmask (%p108_p0), 261120   ;;  %v876_v2 = vld [vmem:[%s1133_s2 + $0x18] sm:$0xff] (%p108_p0)   ;;  %v126_v3 = vld [vmem:[#allocation2 + $0x1] sm:$0xff] (%p108_p0)  ;;  %v977_v5 = vmov (%p108_p0), 0.0   ;;  %vm978_vm1 = vmmov (%p108_p0), 0  }
  0x3a   :  { %110 = sbr.rel (!%p108_p0) target bundleno = 54 (0x36), region = 119  ;;  %776 = vmatprep.subr.bf16.mxu0 (%p108_p0), %v875_v1  ;;  %v127_v4 = vld [vmem:[#allocation2 + $0x9] sm:$0xff] (%p108_p0)  ;;  %115 = vst.msk [vmem:[#allocation2 + $0x20] sm:$0xff] (%p108_p0), %vm114_vm0, %v977_v5  ;;  %816 = vmatprep.subr.bf16.mxu1 (%p108_p0), %v977_v5  ;;  %v877_v7 = vld [vmem:[%s1133_s2] sm:$0xff] (%p108_p0)   ;;  %v128_v10 = vld [vmem:[#allocation2 + $0x11] sm:$0xff] (%p108_p0)  ;;  %vm579_vm2 = vcmask (%p108_p0), 1041409  }
  0x3b   :  { %777 = vmatpush3.bf16.msra.mxu0 (%p108_p0), %v875_v1  ;;  %v130_v6 = vpack.c.bf16 (%p108_p0), %v127_v4, %v126_v3  ;;  %v116_v8 = vld [vmem:[#allocation2] sm:$0xff] (%p108_p0)  ;;  %v117_v9 = vld [vmem:[#allocation2 + $0x8] sm:$0xff] (%p108_p0)  ;;  %v118_v16 = vld [vmem:[#allocation2 + $0x10] sm:$0xff] (%p108_p0)  ;;  %832 = vmatprep.mubr.msk.bf16.mxu1 (%p108_p0), %vm978_vm1, %v977_v5  ;;  %s979_s12 = smov (%p108_p0), [#allocation9]  }
  0x3c   :  { %778 = vmatprep.subr.bf16.mxu0 (%p108_p0), %v876_v2  ;;  %v120_v12 = vpack.c.bf16 (%p108_p0), %v117_v9, %v116_v8  ;;  %v878_v14 = vld [vmem:[%s1133_s2 + $0x8] sm:$0xff] (%p108_p0)   ;;  %v879_v15 = vld [vmem:[%s1133_s2 + $0x20] sm:$0xff] (%p108_p0)   ;;  %v119_v17 = vld [vmem:[#allocation2 + $0x18] sm:$0xff] (%p108_p0)  ;;  %s678_s0 = sshll.u32 (%p108_p0), %s979_s12, 4  ;;  %s679_s0 = int_to_ptr.vmem [resolvable:$true] %s678_s0 }
  0x3d   :  { %780 = vmatprep.mubr.msk.bf16.mxu0 (%p108_p0), %vm114_vm0, %v130_v6  ;;  %v270_v18 = vld [vmem:[#allocation2 + $0x2] sm:$0xff] (%p108_p0)  ;;  %v271_v19 = vld [vmem:[#allocation2 + $0xa] sm:$0xff] (%p108_p0)  ;;  %v121_v20 = vpack.c.bf16 (%p108_p0), %v119_v17, %v118_v16  ;;  %v272_v24 = vld [vmem:[#allocation2 + $0x12] sm:$0xff] (%p108_p0)  ;;  %s927_s13 = scalar_lea.vmem (%p108_p0), %s679_s0, 32  ;;  %p932_p2 = scmp.lt.s32.totalorder (%p108_p0), %s679_s0, %s679_s0 }
  0x3e   :  { %v274_v21 = vpack.c.bf16 (%p108_p0), %v271_v19, %v270_v18  ;;  %v880_v22 = vld [vmem:[%s1133_s2 + $0x28] sm:$0xff] (%p108_p0)   ;;  %v881_v23 = vld [vmem:[%s1133_s2 + $0x30] sm:$0xff] (%p108_p0)   ;;  %v882_v30 = vld [vmem:[%s1133_s2 + $0x38] sm:$0xff] (%p108_p0)   ;;  %p928_p1 = scmp.ne.s32.totalorder (%p108_p0), %s679_s0, %s927_s13  ;;  %p933_p3 = scmp.lt.s32.totalorder (%p108_p0), %s927_s13, %s927_s13 }
  0x3f   :  { %779 = vmatpush3.bf16.msra.mxu0 (%p108_p0), %v876_v2  ;;  %v351_v26 = vld [vmem:[#allocation2 + $0x3] sm:$0xff] (%p108_p0)  ;;  %v352_v27 = vld [vmem:[#allocation2 + $0xb] sm:$0xff] (%p108_p0)  ;;  %v353_v32 = vld [vmem:[#allocation2 + $0x13] sm:$0xff] (%p108_p0) }
  0x40   :  { %784 = vmatprep.subr.bf16.mxu0 (%p108_p0), %v877_v7  ;;  %v355_v29 = vpack.c.bf16 (%p108_p0), %v352_v27, %v351_v26  ;;  %v883_v31 = vld [vmem:[%s1133_s2 + $0x40] sm:$0xff] (%p108_p0)   ;;  %v433_v35 = vld [vmem:[#allocation2 + $0xc] sm:$0xff] (%p108_p0)  ;;  %v434_v39 = vld [vmem:[#allocation2 + $0x14] sm:$0xff] (%p108_p0)  ;;  %p934_p4 = por (%p108_p0), %p933_p3, %p932_p2 }
  0x41   :  { %v129_v11 = vld [vmem:[#allocation2 + $0x19] sm:$0xff]  ;;  %v432_v34 = vld [vmem:[#allocation2 + $0x4] sm:$0xff]  ;;  %v887_v44 = vld [vmem:[%s1136_s5 + $0x10] sm:$0xff]  }
  0x42   :  { %v131_v13 = vpack.c.bf16 %v129_v11, %v128_v10  ;;  %v273_v25 = vld [vmem:[#allocation2 + $0x1a] sm:$0xff]  ;;  %v436_v37 = vpack.c.bf16 %v433_v35, %v432_v34  ;;  %v884_v38 = vld [vmem:[%s1133_s2 + $0x48] sm:$0xff]   ;;  %v891_v48 = vld [vmem:[%s1136_s5 + $0x30] sm:$0xff]   ;;  %p935_p5 = pnand %p934_p4, %p928_p1 }
  0x43   :  { %v275_v28 = vpack.c.bf16 %v273_v25, %v272_v24  ;;  %v354_v33 = vld [vmem:[#allocation2 + $0x1b] sm:$0xff]  ;;  %v886_v43 = vld [vmem:[%s1136_s5 + $0x8] sm:$0xff]   ;;  %v529_v1 = vld [vmem:[#allocation8 + $0x8] sm:$0xff] }
  0x44   :  { %781 = vmatmul.mubr.msk.bf16.vlgmr.msra.gmra.mrb[0].mxu0 %vm114_vm0, %v131_v13  ;;  %v356_v36 = vpack.c.bf16 %v354_v33, %v353_v32  ;;  %v435_v40 = vld [vmem:[#allocation2 + $0x1c] sm:$0xff]  ;;  %v890_v47 = vld [vmem:[%s1136_s5 + $0x28] sm:$0xff]  }
  0x45   :  { %785 = vmatpush3.bf16.msra.mxu0 %v877_v7  ;;  %788 = vmatprep.mubr.msk.bf16.mxu0 %vm114_vm0, %v120_v12  ;;  %v437_v41 = vpack.c.bf16 %v435_v40, %v434_v39  ;;  %v885_v42 = vld [vmem:[%s1136_s5] sm:$0xff]   ;;  %v888_v45 = vld [vmem:[%s1136_s5 + $0x18] sm:$0xff]   ;;  %v528_v63 = vld [vmem:[#allocation8] sm:$0xff] }
  0x46   :  { %786 = vmatprep.subr.bf16.mxu0 %v878_v14  ;;  %817 = vmatpush3.bf16.msra.mxu1 %v885_v42  ;;  %v889_v46 = vld [vmem:[%s1136_s5 + $0x20] sm:$0xff]   ;;  %v892_v49 = vld [vmem:[%s1136_s5 + $0x38] sm:$0xff]  }
  0x47   :  { %818 = vmatprep.subr.bf16.mxu1 %v977_v5  ;;  %v736_v50 = vld [vmem:[%s1134_s3] ss:$0 sm:$0xff]  ;;  %v530_v59 = vld [vmem:[#allocation8 + $0x10] sm:$0xff] }
  0x48   :  { %v531_v61 = vld [vmem:[#allocation8 + $0x18] sm:$0xff] }
  0x49   :  { %787 = vmatpush3.bf16.msra.mxu0 %v878_v14  ;;  %v737_v27 = vld [vmem:[%s1137_s6] ss:$0 sm:$0xff] }
  0x4a   :  { %792 = vmatprep.subr.bf16.mxu0 %v879_v15  ;;  %819 = vmatpush3.bf16.msra.mxu1 %v886_v43 }
  0x4b   :  { %820 = vmatprep.subr.bf16.mxu1 %v977_v5 }
  0x4e   :  { %821 = vmatpush3.bf16.msra.mxu1 %v887_v44 }
  0x4f   :  { %822 = vmatprep.subr.bf16.mxu1 %v977_v5 }
  0x50   :  { %789 = vmatmul.mubr.msk.bf16.vlgmr.msra.gmra.mrb[0].mxu0 %vm114_vm0, %v121_v20 }
  0x51   :  { %793 = vmatpush3.bf16.msra.mxu0 %v879_v15  ;;  %796 = vmatprep.mubr.msk.bf16.mxu0 %vm114_vm0, %v274_v21 }
  0x52   :  { %794 = vmatprep.subr.bf16.mxu0 %v880_v22  ;;  %823 = vmatpush3.bf16.msra.mxu1 %v888_v45 }
  0x53   :  { %824 = vmatprep.subr.bf16.mxu1 %v977_v5 }
  0x55   :  { %795 = vmatpush3.bf16.msra.mxu0 %v880_v22 }
  0x56   :  { %800 = vmatprep.subr.bf16.mxu0 %v881_v23  ;;  %825 = vmatpush3.bf16.msra.mxu1 %v889_v46 }
  0x57   :  { %826 = vmatprep.subr.bf16.mxu1 %v977_v5 }
  0x5a   :  { %827 = vmatpush3.bf16.msra.mxu1 %v890_v47 }
  0x5b   :  { %828 = vmatprep.subr.bf16.mxu1 %v977_v5 }
  0x5c   :  { %797 = vmatmul.mubr.msk.bf16.vlgmr.msra.gmra.mrb[0].mxu0 %vm114_vm0, %v275_v28 }
  0x5d   :  { %801 = vmatpush3.bf16.msra.mxu0 %v881_v23  ;;  %804 = vmatprep.mubr.msk.bf16.mxu0 %vm114_vm0, %v355_v29 }
  0x5e   :  { %802 = vmatprep.subr.bf16.mxu0 %v882_v30  ;;  %829 = vmatpush3.bf16.msra.mxu1 %v891_v48 }
  0x5f   :  { %830 = vmatprep.subr.bf16.mxu1 %v977_v5 }
  0x61   :  { %803 = vmatpush3.bf16.msra.mxu0 %v882_v30 }
  0x62   :  { %808 = vmatprep.subr.bf16.mxu0 %v883_v31  ;;  %831 = vmatpush3.bf16.msra.mxu1 %v892_v49 }
  0x68   :  { %805 = vmatmul.mubr.msk.bf16.vlgmr.msra.gmra.mrb[0].mxu0 %vm114_vm0, %v356_v36 }
  0x69   :  { %809 = vmatpush3.bf16.msra.mxu0 %v883_v31  ;;  %812 = vmatprep.mubr.msk.bf16.mxu0 %vm114_vm0, %v436_v37 }
  0x6a   :  { %810 = vmatprep.subr.bf16.mxu0 %v884_v38 }
  0x6d   :  { %811 = vmatpush3.bf16.msra.mxu0 %v884_v38 }
  0x74   :  { %813 = vmatmul.mubr.msk.bf16.vlgmr.msra.gmra.mrb[0].mxu0 %vm114_vm0, %v437_v41 }
 0x147   :  { %v814_v51 = vpop.f32.mrb[0].mxu0 }
 0x148   :  { %v522_v52 = vadd.f32 %v814_v51, %v736_v50  ;;  %v494_v53 = vpop.f32.mrb[1].mxu0 }
 0x149   :  { %v520_v54 = vadd.f32 %v736_v50, %v494_v53  ;;  %v815_v55 = vpop.f32.mrb[2].mxu0 }
 0x14a   :  { %v526_v56 = vmax.f32 %v522_v52, 0.0  ;;  %v523_v57 = vadd.f32 %v815_v55, %v736_v50  ;;  %v497_v58 = vpop.f32.mrb[3].mxu0 }
 0x14b   :  { %v524_v60 = vmax.f32 %v520_v54, 0.0  ;;  %v521_v62 = vadd.f32 %v736_v50, %v497_v58 }
 0x14c   :  { %v527_v0 = vmax.f32 %v523_v57, 0.0  ;;  %v534_v3 = vmul.f32 %v530_v59, %v526_v56 }
 0x14d   :  { %v525_v2 = vmax.f32 %v521_v62, 0.0  ;;  %v532_v5 = vmul.f32 %v528_v63, %v524_v60 }
 0x14e   :  { %v535_v4 = vmul.f32 %v531_v61, %v527_v0 }
 0x14f   :  { %v533_v6 = vmul.f32 %v529_v1, %v525_v2 }
 0x150   :  { %v543_v7 = vmax.f32 %v534_v3, %v535_v4 }
 0x151   :  { %v536_v8 = vmax.f32 %v532_v5, %v533_v6 }
 0x152   :  { %v544_v9 = vrot.slane %v543_v7, 4 }
 0x153   :  { %v537_v10 = vrot.slane %v536_v8, 4 }
 0x154   :  { %v545_v11 = vmax.f32 %v543_v7, %v544_v9 }
 0x155   :  { %v538_v12 = vmax.f32 %v536_v8, %v537_v10 }
 0x156   :  { %v546_v13 = vrot.slane %v545_v11, 2 }
 0x157   :  { %v539_v14 = vrot.slane %v538_v12, 2 }
 0x158   :  { %v547_v15 = vmax.f32 %v545_v11, %v546_v13 }
 0x159   :  { %v540_v16 = vmax.f32 %v538_v12, %v539_v14 }
 0x15a   :  { %v548_v17 = vrot.slane %v547_v15, 1 }
 0x15b   :  { %v541_v18 = vrot.slane %v540_v16, 1 }
 0x15c   :  { %v549_v19 = vmax.f32 %v547_v15, %v548_v17 }
 0x15d   :  { %v542_v20 = vmax.f32 %v540_v16, %v541_v18 }
 0x15e   :  { %v551_v21 = vpack.c.bf16 %v549_v19, %v549_v19 }
 0x15f   :  { %v550_v22 = vpack.c.bf16 %v542_v20, %v542_v20 }
 0x160   :  { %v578_v23 = vunpack.c.l.b16 %v551_v21 }
 0x161   :  { %v577_v24 = vunpack.c.l.b16 %v550_v22 }
 0x163   :  { %v580_v25 = vsel %vm579_vm2, %v578_v23, %v577_v24 }
 0x164   :  { %v581_v26 = vpack.c.b16 %v580_v25, %v580_v25 }
 0x166   :  { %833 = vmatmul.mubr.bf16.vlgmr.msra.gmra.mrb[0].mxu1 %v581_v26 }
 0x239   :  { %v665_v28 = vpop.f32.mrb[0].mxu1 }
 0x23a   :  { %v666_v29 = vadd.f32 %v737_v27, %v665_v28  ;;  %v834_v30 = vpop.f32.mrb[1].mxu1 }
 0x23b   :  { %v668_v31 = vpop.f32.mrb[2].mxu1 }
 0x23c   :  { %671 = vst [vmem:[#allocation9] sm:$0x3] %v666_v29  ;;  %v835_v32 = vpop.f32.mrb[3].mxu1 }
 0x23d   :  { %938 = shalt.err (!%p935_p5)
}
 0x23e   :  { %s939_s6 = scalar_lea.hbm %s1138_s7, 32 }
 0x23f   :  { %p940_p6 = scmp.ne.s32.totalorder %s1138_s7, %s939_s6  ;;  %p943_p7 = scmp.lt.u32.totalorder %s939_s6, %s1138_s7 }
 0x241   :  { %p945_p8 = pnand %p943_p7, %p940_p6 }
 0x243   :  { %948 = shalt.err (!%p945_p8)
}
 0x244   :  { %681 = dma.vmem_to_hbm [thread:$0]  %s679_s0, 32, %s1138_s7, [#allocation6]  }
 0x245   :  { %963 = dma.done.wait [#allocation6], 32  }
 0x246   :  { %964 = vsyncadd [#allocation6], 4294967264 }
 0x247   :  { %685 = vsyncpa [#allocation5], 1 }
 0x248   :  { %686 = vsyncpa [#allocation6], 1 }
 0x249   :  { %687 = vsyncpa [#allocation7], 1 }
 0x24a   :  { %688 = vsyncmov [#allocation3] }
 0x24d   :  { %s689_s2 = vpop.sfrf %688 }
 0x24e   :  { %p746_p9 = scmp.ne.s32.totalorder %s689_s2, 0 }
 0x250   :  { %693 = shalt.err (%p746_p9)  }

</bundles_post_ra>
